<compile_context>
chip_gen: v5e
topology: v5e:2x2
jax: 0.10.0
libtpu: 0.0.40
codegen_flags: <defaults>
</compile_context>

<pallas_src>
import math

import jax
import jax.numpy as jnp
from jax.experimental import pallas as pl
from jax.experimental.pallas import tpu as pltpu

N_WINDOW = 10   # fixed by the module (self.n_window)
N_HIDDEN = 8    # fixed by the module (self.n_hidden)
_LANE = 128
_SUBLANE = 8
_MAX_TILE_B = 1024
# Matmul operand dtype. bf16 cuts MXU passes ~3x on v6e/v7x and halves the
# src HBM stream; accumulation stays f32. On v5e (no bf16 VPU) elementwise
# math is kept f32 anyway; set to jnp.float32 there if the converts regress.
_MM_DTYPE = jnp.bfloat16


def _round_up(x, m):
    return (x + m - 1) // m * m


def _choose_batch_tile(B):
    """Pick (batch_tile, padded_batch).

    Big tiles amortize the ~0.35 us per-grid-step overhead; >= 2 grid steps
    (whenever B > 16) keeps both v7x TensorCores busy via the "parallel" grid
    axis; tiles are multiples of 16 so bf16 src blocks stay sublane-aligned.
    """
    if B <= 16:
        return 16, 16                       # one padded block; extra rows sliced off
    tb = min(_MAX_TILE_B, _round_up((B + 1) // 2, 16))
    return tb, _round_up(B, tb)


def _make_kernel(F, H, W, n, out_lane, offs, mm_dtype):
    """Builds the kernel with all slab offsets baked in as Python constants."""
    WF = W * F
    F2 = 2 * F
    (o_we1s, o_we1c, o_we2, o_d1a, o_d1b, o_d2a, o_d2b,
     o_wfa, o_wfb, o_tmat) = offs

    def kernel(src_ref, w_ref, b_ref, out_ref):
        f32 = jnp.float32
        relu = jax.nn.relu
        sigmoid = jax.nn.sigmoid

        def mm(a, b):
            # Narrow-precision MXU operands, f32 accumulation.
            return jnp.dot(a.astype(mm_dtype), b, preferred_element_type=f32)

        # ---- static (zero-cost) slices of the resident weight / bias slabs.
        # The slabs have a constant block index so they are DMA'd once; each
        # weight is converted to the matmul dtype once per grid step right
        # after its slice (a handful of vreg converts, co-issued with MXU
        # pushes).  If MLIR ever shows per-step lane-select copies here, the
        # fallback is a one-time copy to VMEM scratch under pl.when(step==0).
        def wslice(off, rows, cols):
            return w_ref[off:off + rows, 0:cols].astype(mm_dtype)

        we1s = wslice(o_we1s, WF, H)          # (W*F, H) encoder L1, src rows
        we1c = wslice(o_we1c, WF, H)          # (W*F, H) encoder L1, c rows
        we2  = wslice(o_we2, H, n)            # (H, n)
        wd1a = wslice(o_d1a, n, H)            # (n, H)
        wd1b = wslice(o_d1b, H, F2)           # (H, 2F)
        wd2a = wslice(o_d2a, n, H)            # (n, H)
        wd2b = wslice(o_d2b, H, F2)           # (H, 2F)
        wfa  = wslice(o_wfa, F2, out_lane)    # (2F, OUT_LANE) = [fcn_w | 0 ...]
        wfb  = wslice(o_wfb, F2, out_lane)    # (2F, OUT_LANE) = [0 | fcn_w | 0 ...]
        tmat = wslice(o_tmat, out_lane, WF)   # (OUT_LANE, W*F) tiling matrix,
                                              #   rows >= F are zero

        be1  = b_ref[0:1, 0:H]
        be2  = b_ref[1:2, 0:n]
        bd1a = b_ref[2:3, 0:H]
        bd1b = b_ref[3:4, 0:F2]
        bd2a = b_ref[4:5, 0:H]
        bd2b = b_ref[5:6, 0:F2]
        bf2  = b_ref[6:7, 0:out_lane]         # [fcn_b | fcn_b | 0 ...]

        src = src_ref[...]                    # (TB, W*F), bf16 straight from HBM
        src_f32 = src.astype(f32)             # f32 copy only for the elementwise c

        # -------- pass 1: encode(src, c=0) -> decoder1 -> fcn --------
        enc1 = relu(mm(relu(mm(src, we1s) + be1), we2) + be2)     # (TB, n)
        d1 = relu(mm(enc1, wd1a) + bd1a)                          # (TB, H)
        d1 = relu(mm(d1, wd1b) + bd1b)                            # (TB, 2F)
        x1_pre = mm(d1, wfa)                  # (TB, OUT_LANE): cols [0,F)=d1@fcn_w, rest 0
        x1_full = sigmoid(x1_pre + bf2)       # cols [0,F) == true x1

        # -------- pass 2: c = (x1 - src)**2, x1 broadcast over windows --------
        x1_t = mm(x1_full, tmat)              # (TB, W*F) == tile(x1, W); junk cols hit zero rows
        c = (x1_t - src_f32) ** 2             # f32 elementwise (v5e-safe)
        # pre_src is recomputed here (extra tiny matmul on an underutilized
        # MXU) instead of being held live across both passes.
        h2 = relu(mm(src, we1s) + mm(c, we1c) + be1)
        enc2 = relu(mm(h2, we2) + be2)
        d2 = relu(mm(enc2, wd2a) + bd2a)
        d2 = relu(mm(d2, wd2b) + bd2b)                            # (TB, 2F)

        # single lane-dense (TB, OUT_LANE) store:
        #   cols [0,F) = x1, cols [F,2F) = x2, cols >= 2F = sigmoid(0) junk.
        out_ref[...] = sigmoid(x1_pre + mm(d2, wfb) + bf2).astype(out_ref.dtype)

    return kernel


def init_params(key, feats):
    """Deterministic synthetic init matching nn.Linear shapes (weights stored (in, out))."""
    n = 2 * feats * N_WINDOW
    H = N_HIDDEN

    def linear(k, fan_in, fan_out):
        k1, k2 = jax.random.split(k)
        bound = 1.0 / math.sqrt(fan_in)
        w = jax.random.uniform(k1, (fan_in, fan_out), jnp.float32, -bound, bound)
        b = jax.random.uniform(k2, (fan_out,), jnp.float32, -bound, bound)
        return w, b

    ks = jax.random.split(key, 7)
    p = {}
    p['enc_w1'], p['enc_b1'] = linear(ks[0], n, H)
    p['enc_w2'], p['enc_b2'] = linear(ks[1], H, n)
    p['d1_w1'], p['d1_b1'] = linear(ks[2], n, H)
    p['d1_w2'], p['d1_b2'] = linear(ks[3], H, 2 * feats)
    p['d2_w1'], p['d2_b1'] = linear(ks[4], n, H)
    p['d2_w2'], p['d2_b2'] = linear(ks[5], H, 2 * feats)
    p['fcn_w'], p['fcn_b'] = linear(ks[6], 2 * feats, feats)
    return p


def tranad_transformer_forward(params, src, tgt=None):
    """src: (W, B, F) float32 (PyTorch layout). tgt accepted but unused, exactly
    like the original module's forward. Returns (x1, x2), each (1, B, F)."""
    del tgt  # never used by the forward
    W, B, F = src.shape
    H = N_HIDDEN
    n = 2 * F * W
    WF = W * F
    F2 = 2 * F
    OUT_LANE = _round_up(F2, _LANE)                    # lane-dense output width
    lane = _round_up(max(n, WF, OUT_LANE), _LANE)      # weight-slab lane width

    # (W,B,F) -> lane-dense (B, W*F), matching the PyTorch permute+flatten
    # order.  NOT lane-padded (that would 3.2x the dominant HBM stream);
    # shipped in the matmul dtype (bf16 halves it instead).
    src_flat = jnp.transpose(src, (1, 0, 2)).reshape(B, WF)
    TB, B_pad = _choose_batch_tile(B)
    if B_pad != B:
        src_flat = jnp.pad(src_flat, ((0, B_pad - B), (0, 0)))
    src_flat = src_flat.astype(_MM_DTYPE)

    # Split encoder Linear1 weight (n, H) into src-rows and c-rows following
    # the (B, W, 2F).flatten(1) ordering, then flatten each to (W*F, H).
    we1 = params['enc_w1'].reshape(W, 2, F, H)
    we1s_flat = we1[:, 0].reshape(WF, H)
    we1c_flat = we1[:, 1].reshape(WF, H)

    # Output-packing fcn weights, widened to a full-lane N:
    #   wfa = [fcn_w | 0 ...], wfb = [0 | fcn_w | 0 ...]       (2F, OUT_LANE)
    wfa = jnp.zeros((F2, OUT_LANE), jnp.float32).at[:, :F].set(params['fcn_w'])
    wfb = jnp.zeros((F2, OUT_LANE), jnp.float32).at[:, F:F2].set(params['fcn_w'])
    # Window-tiling matrix: x1_full @ tmat == tile(x1, W); rows >= F are zero so
    # the junk lanes of the widened x1_full never contribute.
    tmat = jnp.zeros((OUT_LANE, WF), jnp.float32).at[:F, :].set(
        jnp.tile(jnp.eye(F, dtype=jnp.float32), (1, W)))

    # ---- pack all weights into one slab (8-aligned row blocks, lane padded) ----
    mats = [we1s_flat, we1c_flat, params['enc_w2'],
            params['d1_w1'], params['d1_w2'],
            params['d2_w1'], params['d2_w2'],
            wfa, wfb, tmat]
    offs, rows, r = [], [], 0
    for m in mats:
        offs.append(r)
        rp = _round_up(m.shape[0], _SUBLANE)
        rows.append(jnp.zeros((rp, lane), jnp.float32)
                    .at[:m.shape[0], :m.shape[1]].set(m))
        r += rp
    w_slab = jnp.concatenate(rows, axis=0)                 # (Rtot, lane), resident
    Rtot = w_slab.shape[0]

    # ---- pack all biases into one (8, lane) slab, one row per bias ----
    bf2 = (jnp.zeros((OUT_LANE,), jnp.float32)
           .at[:F].set(params['fcn_b']).at[F:F2].set(params['fcn_b']))
    bias_vecs = [params['enc_b1'], params['enc_b2'],
                 params['d1_b1'], params['d1_b2'],
                 params['d2_b1'], params['d2_b2'], bf2]
    b_slab = jnp.zeros((_SUBLANE, lane), jnp.float32)
    for i, v in enumerate(bias_vecs):
        b_slab = b_slab.at[i, :v.shape[0]].set(v)

    grid = (B_pad // TB,)

    out = pl.pallas_call(
        _make_kernel(F, H, W, n, OUT_LANE, tuple(offs), _MM_DTYPE),
        out_shape=jax.ShapeDtypeStruct((B_pad, OUT_LANE), jnp.float32),
        grid=grid,
        in_specs=[
            pl.BlockSpec((TB, WF), lambda i: (i, 0)),          # src_flat (bf16)
            pl.BlockSpec((Rtot, lane), lambda i: (0, 0)),      # weight slab (resident)
            pl.BlockSpec((_SUBLANE, lane), lambda i: (0, 0)),  # bias slab (resident)
        ],
        out_specs=pl.BlockSpec((TB, OUT_LANE), lambda i: (i, 0)),
        compiler_params=pltpu.CompilerParams(
            dimension_semantics=("parallel",),
            vmem_limit_bytes=32 * 1024 * 1024),
    )(src_flat, w_slab, b_slab)

    # PyTorch returns x1, x2 of shape (1, B, F). Padded rows / lanes sliced off.
    x1 = out[:B, :F][None, :, :]
    x2 = out[:B, F:F2][None, :, :]
    return x1, x2


def ref_forward(params, src):
    """Pure-JAX (f32) transliteration of the PyTorch forward, for verification."""
    Wn, B, F = src.shape

    def seq(x, w1, b1, w2, b2):
        return jax.nn.relu(jax.nn.relu(x @ w1 + b1) @ w2 + b2)

    def encode(s, c):
        z = jnp.concatenate([s, c], axis=2)                       # (W, B, 2F)
        z = jnp.transpose(z, (1, 0, 2)).reshape(B, -1)            # (B, n)
        return seq(z, params['enc_w1'], params['enc_b1'],
                   params['enc_w2'], params['enc_b2'])

    def head(enc, w1, b1, w2, b2):
        x = seq(enc, w1, b1, w2, b2)                              # (B, 2F)
        x = x.reshape(-1, 1, 2 * F).transpose(1, 0, 2)            # (1, B, 2F)
        return jax.nn.sigmoid(x @ params['fcn_w'] + params['fcn_b'])  # (1, B, F)

    c = jnp.zeros_like(src)
    x1 = head(encode(src, c),
              params['d1_w1'], params['d1_b1'], params['d1_w2'], params['d1_b2'])
    c = (x1 - src) ** 2
    x2 = head(encode(src, c),
              params['d2_w1'], params['d2_b1'], params['d2_w2'], params['d2_b2'])
    return x1, x2


if __name__ == "__main__":
    import numpy as np

    feats = 4
    key = jax.random.PRNGKey(0)
    kp, ksrc, ktgt, kmid, kbig = jax.random.split(key, 5)

    params = init_params(kp, feats)
    fwd = jax.jit(tranad_transformer_forward)

    def check(src_arr):
        y1, y2 = fwd(params, src_arr)
        jax.block_until_ready((y1, y2))
        r1, r2 = ref_forward(params, src_arr)
        # bf16 MXU operands -> compare against the f32 reference with a
        # correspondingly looser tolerance (outputs are sigmoids in [0, 1]).
        np.testing.assert_allclose(np.asarray(y1), np.asarray(r1), rtol=2e-2, atol=2e-2)
        np.testing.assert_allclose(np.asarray(y2), np.asarray(r2), rtol=2e-2, atol=2e-2)
        return y1, y2

    # small batch: pads to one 16-row block
    batch = 2
    src = jax.random.uniform(ksrc, (N_WINDOW, batch, feats), jnp.float32)
    tgt = jax.random.uniform(ktgt, (N_WINDOW, batch, feats), jnp.float32)  # unused
    x1, x2 = fwd(params, src, tgt)
    jax.block_until_ready((x1, x2))
    r1, r2 = ref_forward(params, src)
    np.testing.assert_allclose(np.asarray(x1), np.asarray(r1), rtol=2e-2, atol=2e-2)
    np.testing.assert_allclose(np.asarray(x2), np.asarray(r2), rtol=2e-2, atol=2e-2)
    assert x1.shape == (1, batch, feats) and x2.shape == (1, batch, feats)

    # ragged batch: exercises wrapper-side padding + multi-step parallel grid
    check(jax.random.uniform(kmid, (N_WINDOW, 100, feats), jnp.float32))

    # large batch: exercises the 1024-row tile with exactly 2 parallel steps
    check(jax.random.uniform(kbig, (N_WINDOW, 2048, feats), jnp.float32))

    print("KERNEL_OK")
</pallas_src>

<mosaic_0001>
module attributes {stable_mosaic.version = 11 : i64} {
  func.func @kernel(%arg0: i32, %arg1: memref<16x40xbf16, #tpu.memory_space<vmem>>, %arg2: memref<408x128xf32, #tpu.memory_space<vmem>>, %arg3: memref<8x128xf32, #tpu.memory_space<vmem>>, %arg4: memref<16x128xf32, #tpu.memory_space<vmem>>) attributes {dimension_semantics = [#tpu.dimension_semantics<parallel>], iteration_bounds = array<i64: 1>, scalar_prefetch = 0 : i64, scratch_operands = 0 : i64, tpu.core_type = #tpu.core_type<tc>, window_params = [{transform_indices = @transform_0, window_bounds = array<i64: 16, 40>}, {pipeline_mode = #tpu.pipeline_mode<synchronous>, transform_indices = @transform_1, window_bounds = array<i64: 408, 128>}, {pipeline_mode = #tpu.pipeline_mode<synchronous>, transform_indices = @transform_2, window_bounds = array<i64: 8, 128>}, {transform_indices = @transform_3, window_bounds = array<i64: 16, 128>}]} {
    %c0 = arith.constant 0 : index
    %c0_0 = arith.constant 0 : index
    %0 = vector.load %arg2[%c0, %c0_0] : memref<408x128xf32, #tpu.memory_space<vmem>>, vector<40x8xf32>
    %1 = arith.truncf %0 : vector<40x8xf32> to vector<40x8xbf16>
    %c40 = arith.constant 40 : index
    %c0_1 = arith.constant 0 : index
    %2 = vector.load %arg2[%c40, %c0_1] : memref<408x128xf32, #tpu.memory_space<vmem>>, vector<40x8xf32>
    %3 = arith.truncf %2 : vector<40x8xf32> to vector<40x8xbf16>
    %c80 = arith.constant 80 : index
    %c0_2 = arith.constant 0 : index
    %4 = vector.load %arg2[%c80, %c0_2] : memref<408x128xf32, #tpu.memory_space<vmem>>, vector<8x80xf32>
    %5 = arith.truncf %4 : vector<8x80xf32> to vector<8x80xbf16>
    %c88 = arith.constant 88 : index
    %c0_3 = arith.constant 0 : index
    %6 = vector.load %arg2[%c88, %c0_3] : memref<408x128xf32, #tpu.memory_space<vmem>>, vector<80x8xf32>
    %7 = arith.truncf %6 : vector<80x8xf32> to vector<80x8xbf16>
    %c168 = arith.constant 168 : index
    %c0_4 = arith.constant 0 : index
    %8 = vector.load %arg2[%c168, %c0_4] : memref<408x128xf32, #tpu.memory_space<vmem>>, vector<8x8xf32>
    %9 = arith.truncf %8 : vector<8x8xf32> to vector<8x8xbf16>
    %c176 = arith.constant 176 : index
    %c0_5 = arith.constant 0 : index
    %10 = vector.load %arg2[%c176, %c0_5] : memref<408x128xf32, #tpu.memory_space<vmem>>, vector<80x8xf32>
    %11 = arith.truncf %10 : vector<80x8xf32> to vector<80x8xbf16>
    %c256 = arith.constant 256 : index
    %c0_6 = arith.constant 0 : index
    %12 = vector.load %arg2[%c256, %c0_6] : memref<408x128xf32, #tpu.memory_space<vmem>>, vector<8x8xf32>
    %13 = arith.truncf %12 : vector<8x8xf32> to vector<8x8xbf16>
    %c264 = arith.constant 264 : index
    %c0_7 = arith.constant 0 : index
    %14 = vector.load %arg2[%c264, %c0_7] : memref<408x128xf32, #tpu.memory_space<vmem>>, vector<8x128xf32>
    %15 = arith.truncf %14 : vector<8x128xf32> to vector<8x128xbf16>
    %c272 = arith.constant 272 : index
    %c0_8 = arith.constant 0 : index
    %16 = vector.load %arg2[%c272, %c0_8] : memref<408x128xf32, #tpu.memory_space<vmem>>, vector<8x128xf32>
    %17 = arith.truncf %16 : vector<8x128xf32> to vector<8x128xbf16>
    %c280 = arith.constant 280 : index
    %c0_9 = arith.constant 0 : index
    %18 = vector.load %arg2[%c280, %c0_9] : memref<408x128xf32, #tpu.memory_space<vmem>>, vector<128x40xf32>
    %19 = arith.truncf %18 : vector<128x40xf32> to vector<128x40xbf16>
    %c0_10 = arith.constant 0 : index
    %c0_11 = arith.constant 0 : index
    %20 = vector.load %arg3[%c0_10, %c0_11] : memref<8x128xf32, #tpu.memory_space<vmem>>, vector<1x8xf32>
    %c1 = arith.constant 1 : index
    %c0_12 = arith.constant 0 : index
    %21 = vector.load %arg3[%c1, %c0_12] : memref<8x128xf32, #tpu.memory_space<vmem>>, vector<1x80xf32>
    %c2 = arith.constant 2 : index
    %c0_13 = arith.constant 0 : index
    %22 = vector.load %arg3[%c2, %c0_13] : memref<8x128xf32, #tpu.memory_space<vmem>>, vector<1x8xf32>
    %c3 = arith.constant 3 : index
    %c0_14 = arith.constant 0 : index
    %23 = vector.load %arg3[%c3, %c0_14] : memref<8x128xf32, #tpu.memory_space<vmem>>, vector<1x8xf32>
    %c4 = arith.constant 4 : index
    %c0_15 = arith.constant 0 : index
    %24 = vector.load %arg3[%c4, %c0_15] : memref<8x128xf32, #tpu.memory_space<vmem>>, vector<1x8xf32>
    %c5 = arith.constant 5 : index
    %c0_16 = arith.constant 0 : index
    %25 = vector.load %arg3[%c5, %c0_16] : memref<8x128xf32, #tpu.memory_space<vmem>>, vector<1x8xf32>
    %c6 = arith.constant 6 : index
    %c0_17 = arith.constant 0 : index
    %26 = vector.load %arg3[%c6, %c0_17] : memref<8x128xf32, #tpu.memory_space<vmem>>, vector<1x128xf32>
    %c0_18 = arith.constant 0 : index
    %c0_19 = arith.constant 0 : index
    %27 = vector.load %arg1[%c0_18, %c0_19] : memref<16x40xbf16, #tpu.memory_space<vmem>>, vector<16x40xbf16>
    %28 = arith.extf %27 : vector<16x40xbf16> to vector<16x40xf32>
    %cst = arith.constant dense<0.000000e+00> : vector<16x8xf32>
    %29 = tpu.matmul %27, %1, %cst {dimension_numbers = #tpu.dot_dimension_numbers<[1], [0], [0], [1], [0, 0, 1, 1], [], []>} : vector<16x40xbf16>, vector<40x8xbf16>, vector<16x8xf32> -> vector<16x8xf32>
    %30 = vector.broadcast %20 : vector<1x8xf32> to vector<16x8xf32>
    %31 = arith.addf %29, %30 : vector<16x8xf32>
    %cst_20 = arith.constant 0.000000e+00 : f32
    %32 = vector.broadcast %cst_20 : f32 to vector<16x8xf32>
    %33 = arith.maximumf %31, %32 : vector<16x8xf32>
    %34 = arith.truncf %33 : vector<16x8xf32> to vector<16x8xbf16>
    %cst_21 = arith.constant dense<0.000000e+00> : vector<16x80xf32>
    %35 = tpu.matmul %34, %5, %cst_21 {dimension_numbers = #tpu.dot_dimension_numbers<[1], [0], [0], [1], [0, 0, 1, 1], [], []>} : vector<16x8xbf16>, vector<8x80xbf16>, vector<16x80xf32> -> vector<16x80xf32>
    %36 = vector.broadcast %21 : vector<1x80xf32> to vector<16x80xf32>
    %37 = arith.addf %35, %36 : vector<16x80xf32>
    %cst_22 = arith.constant 0.000000e+00 : f32
    %38 = vector.broadcast %cst_22 : f32 to vector<16x80xf32>
    %39 = arith.maximumf %37, %38 : vector<16x80xf32>
    %40 = arith.truncf %39 : vector<16x80xf32> to vector<16x80xbf16>
    %cst_23 = arith.constant dense<0.000000e+00> : vector<16x8xf32>
    %41 = tpu.matmul %40, %7, %cst_23 {dimension_numbers = #tpu.dot_dimension_numbers<[1], [0], [0], [1], [0, 0, 1, 1], [], []>} : vector<16x80xbf16>, vector<80x8xbf16>, vector<16x8xf32> -> vector<16x8xf32>
    %42 = vector.broadcast %22 : vector<1x8xf32> to vector<16x8xf32>
    %43 = arith.addf %41, %42 : vector<16x8xf32>
    %cst_24 = arith.constant 0.000000e+00 : f32
    %44 = vector.broadcast %cst_24 : f32 to vector<16x8xf32>
    %45 = arith.maximumf %43, %44 : vector<16x8xf32>
    %46 = arith.truncf %45 : vector<16x8xf32> to vector<16x8xbf16>
    %cst_25 = arith.constant dense<0.000000e+00> : vector<16x8xf32>
    %47 = tpu.matmul %46, %9, %cst_25 {dimension_numbers = #tpu.dot_dimension_numbers<[1], [0], [0], [1], [0, 0, 1, 1], [], []>} : vector<16x8xbf16>, vector<8x8xbf16>, vector<16x8xf32> -> vector<16x8xf32>
    %48 = vector.broadcast %23 : vector<1x8xf32> to vector<16x8xf32>
    %49 = arith.addf %47, %48 : vector<16x8xf32>
    %cst_26 = arith.constant 0.000000e+00 : f32
    %50 = vector.broadcast %cst_26 : f32 to vector<16x8xf32>
    %51 = arith.maximumf %49, %50 : vector<16x8xf32>
    %52 = arith.truncf %51 : vector<16x8xf32> to vector<16x8xbf16>
    %cst_27 = arith.constant dense<0.000000e+00> : vector<16x128xf32>
    %53 = tpu.matmul %52, %15, %cst_27 {dimension_numbers = #tpu.dot_dimension_numbers<[1], [0], [0], [1], [0, 0, 1, 1], [], []>} : vector<16x8xbf16>, vector<8x128xbf16>, vector<16x128xf32> -> vector<16x128xf32>
    %54 = vector.broadcast %26 : vector<1x128xf32> to vector<16x128xf32>
    %55 = arith.addf %53, %54 : vector<16x128xf32>
    %56 = arith.negf %55 : vector<16x128xf32>
    %57 = math.exp %56 : vector<16x128xf32>
    %cst_28 = arith.constant 1.000000e+00 : f32
    %58 = vector.broadcast %cst_28 : f32 to vector<16x128xf32>
    %59 = arith.addf %58, %57 : vector<16x128xf32>
    %60 = arith.divf %58, %59 : vector<16x128xf32>
    %61 = arith.truncf %60 : vector<16x128xf32> to vector<16x128xbf16>
    %cst_29 = arith.constant dense<0.000000e+00> : vector<16x40xf32>
    %62 = tpu.matmul %61, %19, %cst_29 {dimension_numbers = #tpu.dot_dimension_numbers<[1], [0], [0], [1], [0, 0, 1, 1], [], []>} : vector<16x128xbf16>, vector<128x40xbf16>, vector<16x40xf32> -> vector<16x40xf32>
    %63 = arith.subf %62, %28 : vector<16x40xf32>
    %64 = arith.mulf %63, %63 : vector<16x40xf32>
    %cst_30 = arith.constant dense<0.000000e+00> : vector<16x8xf32>
    %65 = tpu.matmul %27, %1, %cst_30 {dimension_numbers = #tpu.dot_dimension_numbers<[1], [0], [0], [1], [0, 0, 1, 1], [], []>} : vector<16x40xbf16>, vector<40x8xbf16>, vector<16x8xf32> -> vector<16x8xf32>
    %66 = arith.truncf %64 : vector<16x40xf32> to vector<16x40xbf16>
    %cst_31 = arith.constant dense<0.000000e+00> : vector<16x8xf32>
    %67 = tpu.matmul %66, %3, %cst_31 {dimension_numbers = #tpu.dot_dimension_numbers<[1], [0], [0], [1], [0, 0, 1, 1], [], []>} : vector<16x40xbf16>, vector<40x8xbf16>, vector<16x8xf32> -> vector<16x8xf32>
    %68 = arith.addf %65, %67 : vector<16x8xf32>
    %69 = vector.broadcast %20 : vector<1x8xf32> to vector<16x8xf32>
    %70 = arith.addf %68, %69 : vector<16x8xf32>
    %cst_32 = arith.constant 0.000000e+00 : f32
    %71 = vector.broadcast %cst_32 : f32 to vector<16x8xf32>
    %72 = arith.maximumf %70, %71 : vector<16x8xf32>
    %73 = arith.truncf %72 : vector<16x8xf32> to vector<16x8xbf16>
    %cst_33 = arith.constant dense<0.000000e+00> : vector<16x80xf32>
    %74 = tpu.matmul %73, %5, %cst_33 {dimension_numbers = #tpu.dot_dimension_numbers<[1], [0], [0], [1], [0, 0, 1, 1], [], []>} : vector<16x8xbf16>, vector<8x80xbf16>, vector<16x80xf32> -> vector<16x80xf32>
    %75 = vector.broadcast %21 : vector<1x80xf32> to vector<16x80xf32>
    %76 = arith.addf %74, %75 : vector<16x80xf32>
    %cst_34 = arith.constant 0.000000e+00 : f32
    %77 = vector.broadcast %cst_34 : f32 to vector<16x80xf32>
    %78 = arith.maximumf %76, %77 : vector<16x80xf32>
    %79 = arith.truncf %78 : vector<16x80xf32> to vector<16x80xbf16>
    %cst_35 = arith.constant dense<0.000000e+00> : vector<16x8xf32>
    %80 = tpu.matmul %79, %11, %cst_35 {dimension_numbers = #tpu.dot_dimension_numbers<[1], [0], [0], [1], [0, 0, 1, 1], [], []>} : vector<16x80xbf16>, vector<80x8xbf16>, vector<16x8xf32> -> vector<16x8xf32>
    %81 = vector.broadcast %24 : vector<1x8xf32> to vector<16x8xf32>
    %82 = arith.addf %80, %81 : vector<16x8xf32>
    %cst_36 = arith.constant 0.000000e+00 : f32
    %83 = vector.broadcast %cst_36 : f32 to vector<16x8xf32>
    %84 = arith.maximumf %82, %83 : vector<16x8xf32>
    %85 = arith.truncf %84 : vector<16x8xf32> to vector<16x8xbf16>
    %cst_37 = arith.constant dense<0.000000e+00> : vector<16x8xf32>
    %86 = tpu.matmul %85, %13, %cst_37 {dimension_numbers = #tpu.dot_dimension_numbers<[1], [0], [0], [1], [0, 0, 1, 1], [], []>} : vector<16x8xbf16>, vector<8x8xbf16>, vector<16x8xf32> -> vector<16x8xf32>
    %87 = vector.broadcast %25 : vector<1x8xf32> to vector<16x8xf32>
    %88 = arith.addf %86, %87 : vector<16x8xf32>
    %cst_38 = arith.constant 0.000000e+00 : f32
    %89 = vector.broadcast %cst_38 : f32 to vector<16x8xf32>
    %90 = arith.maximumf %88, %89 : vector<16x8xf32>
    %91 = arith.truncf %90 : vector<16x8xf32> to vector<16x8xbf16>
    %cst_39 = arith.constant dense<0.000000e+00> : vector<16x128xf32>
    %92 = tpu.matmul %91, %17, %cst_39 {dimension_numbers = #tpu.dot_dimension_numbers<[1], [0], [0], [1], [0, 0, 1, 1], [], []>} : vector<16x8xbf16>, vector<8x128xbf16>, vector<16x128xf32> -> vector<16x128xf32>
    %93 = arith.addf %53, %92 : vector<16x128xf32>
    %94 = vector.broadcast %26 : vector<1x128xf32> to vector<16x128xf32>
    %95 = arith.addf %93, %94 : vector<16x128xf32>
    %96 = arith.negf %95 : vector<16x128xf32>
    %97 = math.exp %96 : vector<16x128xf32>
    %cst_40 = arith.constant 1.000000e+00 : f32
    %98 = vector.broadcast %cst_40 : f32 to vector<16x128xf32>
    %99 = arith.addf %98, %97 : vector<16x128xf32>
    %100 = arith.divf %98, %99 : vector<16x128xf32>
    %c0_41 = arith.constant 0 : index
    %c0_42 = arith.constant 0 : index
    %101 = vector.load %arg4[%c0_41, %c0_42] : memref<16x128xf32, #tpu.memory_space<vmem>>, vector<16x128xf32>
    tpu.vector_store %arg4[%c0_41, %c0_42], %100 {strides = array<i32>} : memref<16x128xf32, #tpu.memory_space<vmem>>, vector<16x128xf32>,
    return
  }
  func.func @transform_0(%arg0: i32) -> (i32, i32) {
    %c0_i32 = arith.constant 0 : i32
    %c0_i32_0 = arith.constant 0 : i32
    return %arg0, %c0_i32 : i32, i32
  }
  func.func @transform_1(%arg0: i32) -> (i32, i32) {
    %c0_i32 = arith.constant 0 : i32
    %c0_i32_0 = arith.constant 0 : i32
    %c0_i32_1 = arith.constant 0 : i32
    return %c0_i32, %c0_i32_0 : i32, i32
  }
  func.func @transform_2(%arg0: i32) -> (i32, i32) {
    %c0_i32 = arith.constant 0 : i32
    %c0_i32_0 = arith.constant 0 : i32
    %c0_i32_1 = arith.constant 0 : i32
    return %c0_i32, %c0_i32_0 : i32, i32
  }
  func.func @transform_3(%arg0: i32) -> (i32, i32) {
    %c0_i32 = arith.constant 0 : i32
    %c0_i32_0 = arith.constant 0 : i32
    return %arg0, %c0_i32 : i32, i32
  }
}

</mosaic_0001>

<bundles_post_ra>
// kernel: tranad_transformer_forward.1
= control target key start
LH: loop header
LB: loop body
LE: loop exit
PB: predicated region body
PF: predicated region fallthrough
CT: control target
= control target key end

     0   :  { %vm116_vm0 = vcmask 1043456   ;;  %vm112_vm1 = vcmask 326656   ;;  %vm138_vm2 = vcmask 64512   ;;  %vm163_vm3 = vcmask 654336   ;;  %s766_s1 = inlined_call_operand.vmem [shape: f32[408,128], index: 1, kind: input, shape index: {}]   ;;  %s767_s2 = inlined_call_operand.vmem [shape: f32[8,128], index: 2, kind: input, shape index: {}]   ;;  %s768_s0 = inlined_call_operand.vmem [shape: bf16[16,40], index: 0, kind: input, shape index: {}]   ;;  %s769_s3 = inlined_call_operand.vmem [shape: f32[16,128], index: 3, kind: output, shape index: {}]  }
   0x1   :  { %v19_v0 = vld [vmem:[%s766_s1 + $0x20] sm:$0xff]  ;;  %v17_v2 = vld [vmem:[%s766_s1 + $0x10] sm:$0xff]  ;;  %v18_v3 = vld [vmem:[%s766_s1 + $0x18] sm:$0xff] }
   0x2   :  { %v22_v1 = vpack.c.bf16 %v19_v0, %v19_v0  ;;  %v537_v5 = vpack.c.bf16 %v18_v3, %v17_v2  ;;  %v15_v6 = vld [vmem:[%s766_s1] sm:$0xff]  ;;  %v16_v7 = vld [vmem:[%s766_s1 + $0x8] sm:$0xff]  ;;  %v31_v10 = vld [vmem:[%s766_s1 + $0x50] sm:$0xff] }
   0x3   :  { %v20_v8 = vpack.c.bf16 %v16_v7, %v15_v6  ;;  %v549_v9 = vld [vmem:[%s768_s0] sm:$0xff]  ;;  %v32_v11 = vpack.c.bf16 %v31_v10, %v31_v10  ;;  %v41_v13 = vld [vmem:[%s766_s1 + $0x98] sm:$0xff]  ;;  %v39_v24 = vld [vmem:[%s766_s1 + $0x88] sm:$0xff] }
   0x4   :  { %v534_v4 = vsel %vm116_vm0, %v22_v1, 0  ;;  %v42_v14 = vld [vmem:[%s766_s1 + $0xa0] sm:$0xff]  ;;  %v40_v25 = vld [vmem:[%s766_s1 + $0x90] sm:$0xff]  ;;  %v37_v27 = vld [vmem:[%s766_s1 + $0x78] sm:$0xff] }
   0x5   :  { %125 = vmatpush.bf16.msra.mxu0 %v534_v4  ;;  %v143_v12 = vsel %vm116_vm0, %v32_v11, 0  ;;  %v47_v15 = vpack.c.bf16 %v42_v14, %v41_v13  ;;  %v566_v17 = vld [vmem:[%s767_s2] ss:$0 sm:$0xff]  ;;  %v46_v26 = vpack.c.bf16 %v40_v25, %v39_v24  ;;  %v35_v30 = vld [vmem:[%s766_s1 + $0x68] sm:$0xff]  ;;  %v36_v31 = vld [vmem:[%s766_s1 + $0x70] sm:$0xff] }
   0x6   :  { %152 = vmatpush.bf16.msra.mxu1 %v143_v12  ;;  %v38_v28 = vld [vmem:[%s766_s1 + $0x80] sm:$0xff]  ;;  %v44_v32 = vpack.c.bf16 %v36_v31, %v35_v30  ;;  %v33_v33 = vld [vmem:[%s766_s1 + $0x58] sm:$0xff]  ;;  %v48_v44 = vld [vmem:[%s766_s1 + $0xa8] sm:$0xff] }
   0x7   :  { %170 = vmatpush.bf16.msra.mxu2 %v47_v15  ;;  %v45_v29 = vpack.c.bf16 %v38_v28, %v37_v27  ;;  %v34_v34 = vld [vmem:[%s766_s1 + $0x60] sm:$0xff]  ;;  %v49_v45 = vpack.c.bf16 %v48_v44, %v48_v44  ;;  %v67_v47 = vld [vmem:[%s766_s1 + $0x108] sm:$0xff]  ;;  %v86_v3 = vld [vmem:[%s766_s1 + $0x190] sm:$0xff] }
   0x8   :  { %v43_v35 = vpack.c.bf16 %v34_v34, %v33_v33  ;;  %v598_v37 = vld [vmem:[%s767_s2 + $0x1] ss:$0 sm:$0xff]  ;;  %v68_v48 = vpack.c.bf16 %v67_v47, %v67_v47  ;;  %v483_v51 = vld [vmem:[%s767_s2 + $0x2] ss:$0 sm:$0xff]  ;;  %v484_v59 = vld [vmem:[%s767_s2 + $0x3] ss:$0 sm:$0xff] }
   0x9   :  { %126 = vmatpush.bf16.msra.mxu0 %v537_v5  ;;  %v189_v46 = vsel %vm116_vm0, %v49_v45, 0  ;;  %v85_v2 = vld [vmem:[%s766_s1 + $0x188] sm:$0xff]  ;;  %v84_v6 = vld [vmem:[%s766_s1 + $0x180] sm:$0xff]  ;;  %v79_v11 = vld [vmem:[%s766_s1 + $0x158] sm:$0xff] }
   0xa   :  { %198 = vmatpush.bf16.msra.mxu3 %v189_v46  ;;  %v212_v49 = vsel %vm116_vm0, %v68_v48, 0  ;;  %v77_v14 = vld [vmem:[%s766_s1 + $0x148] sm:$0xff]  ;;  %v78_v15 = vld [vmem:[%s766_s1 + $0x150] sm:$0xff]  ;;  %v71_v25 = vld [vmem:[%s766_s1 + $0x118] sm:$0xff] }
   0xb   :  { %171 = vmatpush.bf16.msra.mxu2 %v46_v26  ;;  %221 = vmatpush.bf16.msrb.mxu1 %v212_v49  ;;  %v72_v26 = vld [vmem:[%s766_s1 + $0x120] sm:$0xff]  ;;  %v27_v33 = vld [vmem:[%s766_s1 + $0x48] sm:$0xff] }
   0xc   :  { %v30_v34 = vpack.c.bf16 %v27_v33, %v27_v33  ;;  %v56_v33 = vld [vmem:[%s766_s1 + $0xe0] sm:$0xff] }
   0xd   :  { %127 = vmatpush.bf16.msra.mxu0 %v20_v8 }
   0xf   :  { %172 = vmatpush.bf16.msra.mxu2 %v45_v29  ;;  %v87_v29 = vpack.c.bf16 %v72_v26, %v71_v25 }
  0x10   :  { %465 = vmatmul.msk.bf16.vlgmr.msra.gmra.mxu0 %vm112_vm1, %v549_v9 }
  0x13   :  { %173 = vmatpush.bf16.msra.mxu2 %v44_v32 }
  0x17   :  { %174 = vmatpush.bf16.msra.mxu2 %v43_v35 }
  0x1b   :  { %338 = vmatpush.bf16.msrb.mxu2 %v143_v12  ;;  %v80_v12 = vld [vmem:[%s766_s1 + $0x160] sm:$0xff] }
  0x1c   :  { %v91_v13 = vpack.c.bf16 %v80_v12, %v79_v11 }
  0x8d   :  { %v129_v16 = vpop.f32.mrf.mxu0 }
  0x8e   :  { %v130_v18 = vadd.f32 %v566_v17, %v129_v16  ;;  %v90_v16 = vpack.c.bf16 %v78_v15, %v77_v14  ;;  %v58_v15 = vld [vmem:[%s766_s1 + $0xf0] sm:$0xff] }
  0x90   :  { %v134_v21 = vmax.f32 %v130_v18, 0.0  ;;  %v75_v18 = vld [vmem:[%s766_s1 + $0x138] sm:$0xff] }
  0x95   :  { %v131_v19 = vpop.f32.mrf.mxu0 }
  0x96   :  { %v132_v20 = vadd.f32 %v566_v17, %v131_v19  ;;  %v76_v19 = vld [vmem:[%s766_s1 + $0x140] sm:$0xff] }
  0x98   :  { %v135_v22 = vmax.f32 %v132_v20, 0.0  ;;  %v89_v20 = vpack.c.bf16 %v76_v19, %v75_v18 }
  0x9a   :  { %v136_v23 = vpack.c.bf16 %v135_v22, %v134_v21  ;;  %v73_v21 = vld [vmem:[%s766_s1 + $0x128] sm:$0xff]  ;;  %v74_v22 = vld [vmem:[%s766_s1 + $0x130] sm:$0xff] }
  0x9b   :  { %v88_v24 = vpack.c.bf16 %v74_v22, %v73_v21 }
  0x9c   :  { %466 = vmatmul.msk.bf16.vlgmr.msra.gmra.mxu1 %vm138_vm2, %v136_v23  ;;  %v668_v23 = vld [vmem:[%s767_s2 + $0x6] ss:$0 sm:$0xff] }
  0x9d   :  { %314 = vmatpush.bf16.msra.mxu1 %v534_v4  ;;  %v94_v4 = vpack.c.bf16 %v86_v3, %v85_v2  ;;  %v23_v2 = vld [vmem:[%s766_s1 + $0x28] sm:$0xff]  ;;  %v24_v3 = vld [vmem:[%s766_s1 + $0x30] sm:$0xff] }
  0x9f   :  { %270 = vmatpush.bf16.msrb.mxu3 %v94_v4  ;;  %v28_v4 = vpack.c.bf16 %v24_v3, %v23_v2  ;;  %v487_v2 = vld [vmem:[%s767_s2 + $0x5] ss:$0 sm:$0xff] }
  0xa1   :  { %315 = vmatpush.bf16.msra.mxu1 %v537_v5  ;;  %v83_v5 = vld [vmem:[%s766_s1 + $0x178] sm:$0xff] }
  0xa2   :  { %v93_v7 = vpack.c.bf16 %v84_v6, %v83_v5  ;;  %v102_v5 = vld [vmem:[%s768_s0] sm:$0xff]  }
  0xa4   :  { %271 = vmatpush.bf16.msrb.mxu3 %v93_v7  ;;  %v104_v7 = vunpack.c.l.bf16 %v102_v5 }
  0xa5   :  { %316 = vmatpush.bf16.msra.mxu1 %v20_v8  ;;  %v81_v8 = vld [vmem:[%s766_s1 + $0x168] sm:$0xff] }
 0x119   :  { %v154_v36 = vpop.f32.mrf.mxu1 }
 0x11a   :  { %v155_v38 = vadd.f32 %v598_v37, %v154_v36 }
 0x11c   :  { %v159_v41 = vmax.f32 %v155_v38, 0.0 }
 0x121   :  { %v156_v39 = vpop.f32.mrf.mxu1 }
 0x122   :  { %v157_v40 = vadd.f32 %v598_v37, %v156_v39  ;;  %v293_v39 = vsel %vm116_vm0, %v30_v34, 0  ;;  %v57_v34 = vld [vmem:[%s766_s1 + $0xe8] sm:$0xff] }
 0x123   :  { %300 = vmatpush.bf16.msrb.mxu0 %v293_v39  ;;  %v52_v39 = vld [vmem:[%s766_s1 + $0xc0] sm:$0xff] }
 0x124   :  { %v160_v42 = vmax.f32 %v157_v40, 0.0 }
 0x126   :  { %v161_v43 = vpack.c.bf16 %v160_v42, %v159_v41 }
 0x128   :  { %467 = vmatmul.msk.bf16.vlgmr.msra.gmra.mxu2 %vm163_vm3, %v161_v43 }
 0x1ab   :  { %v176_v50 = vpop.f32.mrf.mxu2 }
 0x1ac   :  { %v177_v52 = vadd.f32 %v483_v51, %v176_v50 }
 0x1ae   :  { %v181_v55 = vmax.f32 %v177_v52, 0.0 }
 0x1b3   :  { %v178_v53 = vpop.f32.mrf.mxu2 }
 0x1b4   :  { %v179_v54 = vadd.f32 %v483_v51, %v178_v53 }
 0x1b6   :  { %v182_v56 = vmax.f32 %v179_v54, 0.0 }
 0x1b8   :  { %v183_v57 = vpack.c.bf16 %v182_v56, %v181_v55 }
 0x1ba   :  { %468 = vmatmul.msk.bf16.vlgmr.msra.gmra.mxu3 %vm138_vm2, %v183_v57 }
 0x23d   :  { %v200_v58 = vpop.f32.mrf.mxu3 }
 0x23e   :  { %v201_v60 = vadd.f32 %v484_v59, %v200_v58 }
 0x240   :  { %v205_v63 = vmax.f32 %v201_v60, 0.0 }
 0x245   :  { %v202_v61 = vpop.f32.mrf.mxu3 }
 0x246   :  { %v203_v62 = vadd.f32 %v484_v59, %v202_v61 }
 0x248   :  { %v206_v0 = vmax.f32 %v203_v62, 0.0 }
 0x24a   :  { %v207_v1 = vpack.c.bf16 %v206_v0, %v205_v63  ;;  %v25_v63 = vld [vmem:[%s766_s1 + $0x38] sm:$0xff]  ;;  %v26_v0 = vld [vmem:[%s766_s1 + $0x40] sm:$0xff] }
 0x24c   :  { %469 = vmatmul.msk.bf16.vlgmr.msrb.gmra.mxu1 %vm138_vm2, %v207_v1  ;;  %v29_v1 = vpack.c.bf16 %v26_v0, %v25_v63 }
 0x24e   :  { %301 = vmatpush.bf16.msrb.mxu0 %v29_v1 }
 0x252   :  { %302 = vmatpush.bf16.msrb.mxu0 %v28_v4 }
 0x25c   :  { %473 = vmatmul.msk.bf16.vlgmr.msra.gmra.mxu1 %vm112_vm1, %v549_v9  ;;  %v82_v9 = vld [vmem:[%s766_s1 + $0x170] sm:$0xff] }
 0x25d   :  { %v92_v10 = vpack.c.bf16 %v82_v9, %v81_v8  ;;  %v105_v8 = vunpack.c.h.bf16 %v102_v5 }
 0x25f   :  { %272 = vmatpush.bf16.msrb.mxu3 %v92_v10 }
 0x263   :  { %273 = vmatpush.bf16.msrb.mxu3 %v91_v13 }
 0x267   :  { %274 = vmatpush.bf16.msrb.mxu3 %v90_v16  ;;  %v59_v16 = vld [vmem:[%s766_s1 + $0xf8] sm:$0xff] }
 0x268   :  { %v64_v18 = vpack.c.bf16 %v59_v16, %v58_v15 }
 0x26a   :  { %355 = vmatpush.bf16.msra.mxu0 %v64_v18 }
 0x26b   :  { %275 = vmatpush.bf16.msrb.mxu3 %v89_v20 }
 0x26f   :  { %276 = vmatpush.bf16.msrb.mxu3 %v88_v24 }
 0x273   :  { %277 = vmatpush.bf16.msrb.mxu3 %v87_v29 }
 0x2c9   :  { %v676_v27 = vpop.f32.mrf.mxu1 }
 0x2ca   :  { %v229_v28 = vadd.f32 %v668_v23, %v676_v27 }
 0x2cc   :  { %v470_v30 = vmul.f32 -1.442695, %v229_v28 }
 0x2ce   :  { %488 = vpow2.f32 %v470_v30 }
 0x2d1   :  { %v680_v31 = vpop.f32.mrf.mxu1 }
 0x2d2   :  { %v230_v32 = vadd.f32 %v668_v23, %v680_v31 }
 0x2d4   :  { %v489_v35 = vpop.eup %488  ;;  %v471_v36 = vmul.f32 -1.442695, %v230_v32 }
 0x2d5   :  { %v237_v38 = vadd.f32 1.0, %v489_v35  ;;  %v63_v35 = vpack.c.bf16 %v57_v34, %v56_v33 }
 0x2d6   :  { %490 = vpow2.f32 %v471_v36  ;;  %v54_v36 = vld [vmem:[%s766_s1 + $0xd0] sm:$0xff] }
 0x2d7   :  { %492 = vrcp.f32 %v237_v38  ;;  %vm244_vm5 = vweird.f32 %v237_v38  ;;  %v250_v50 = vand.u32 2147483648, %v237_v38  ;;  %v248_v52 = vand.u32 2147483647, %v237_v38  ;;  %356 = vmatpush.bf16.msra.mxu0 %v63_v35 }
 0x2d9   :  { %v251_v57 = vor.u32 1.1754944e-38, %v250_v50  ;;  %vm249_vm10 = vcmp.eq.f32.partialorder %v248_v52, 8.507059e+37  ;;  %v318_v19 = vpop.f32.mrf.mxu1 }
 0x2dc   :  { %v491_v40 = vpop.eup %490 }
 0x2dd   :  { %v493_v41 = vpop.eup %492  ;;  %v238_v42 = vadd.f32 1.0, %v491_v40  ;;  %v53_v40 = vld [vmem:[%s766_s1 + $0xc8] sm:$0xff] }
 0x2de   :  { %v240_v43 = vmul.f32 %v493_v41, %v237_v38  ;;  %vm245_vm4 = vweird.f32 %v493_v41 }
 0x2df   :  { %494 = vrcp.f32 %v238_v42  ;;  %v265_v51 = vand.u32 2147483648, %v238_v42  ;;  %v263_v54 = vand.u32 2147483647, %v238_v42  ;;  %vm246_vm7 = vmor %vm244_vm5, %vm245_vm4  ;;  %vm259_vm8 = vweird.f32 %v238_v42 }
 0x2e0   :  { %v241_v44 = vsub.f32 1.0, %v240_v43  ;;  %v51_v43 = vld [vmem:[%s766_s1 + $0xb8] sm:$0xff] }
 0x2e1   :  { %v266_v58 = vor.u32 1.1754944e-38, %v265_v51  ;;  %vm264_vm11 = vcmp.eq.f32.partialorder %v263_v54, 8.507059e+37  ;;  %v320_v22 = vpop.f32.mrf.mxu1 }
 0x2e2   :  { %v242_v45 = vmul.f32 %v493_v41, %v241_v44 }
 0x2e4   :  { %v243_v48 = vadd.f32 %v493_v41, %v242_v45  ;;  %v65_v45 = vld [vmem:[%s766_s1 + $0x100] sm:$0xff] }
 0x2e5   :  { %v495_v46 = vpop.eup %494 }
 0x2e6   :  { %v255_v47 = vmul.f32 %v495_v46, %v238_v42  ;;  %vm260_vm6 = vweird.f32 %v495_v46  ;;  %v247_v55 = vsel %vm246_vm7, %v493_v41, %v243_v48  ;;  %v61_v41 = vpack.c.bf16 %v53_v40, %v52_v39  ;;  %v50_v42 = vld [vmem:[%s766_s1 + $0xb0] sm:$0xff] }
 0x2e7   :  { %vm261_vm9 = vmor %vm259_vm8, %vm260_vm6  ;;  %v252_v60 = vsel %vm249_vm10, %v251_v57, %v247_v55  ;;  %v60_v44 = vpack.c.bf16 %v51_v43, %v50_v42  ;;  %v69_v55 = vld [vmem:[%s766_s1 + $0x110] sm:$0xff] }
 0x2e8   :  { %v256_v49 = vsub.f32 1.0, %v255_v47 }
 0x2ea   :  { %v257_v53 = vmul.f32 %v495_v46, %v256_v49 }
 0x2ec   :  { %v258_v56 = vadd.f32 %v495_v46, %v257_v53 }
 0x2ee   :  { %v262_v59 = vsel %vm261_vm9, %v495_v46, %v258_v56  ;;  %v66_v46 = vpack.c.bf16 %v65_v45, %v65_v45  ;;  %v70_v56 = vpack.c.bf16 %v69_v55, %v69_v55 }
 0x2ef   :  { %v267_v61 = vsel %vm264_vm11, %v266_v58, %v262_v59  ;;  %v486_v59 = vld [vmem:[%s767_s2 + $0x4] ss:$0 sm:$0xff] }
 0x2f0   :  { %v269_v62 = vpack.c.bf16 %v267_v61, %v252_v60  ;;  %v374_v47 = vsel %vm116_vm0, %v66_v46, 0  ;;  %v397_v57 = vsel %vm116_vm0, %v70_v56, 0 }
 0x2f1   :  { %383 = vmatpush.bf16.msrb.mxu1 %v374_v47  ;;  %406 = vmatpush.bf16.msra.mxu2 %v397_v57 }
 0x2f2   :  { %278 = vmatmul.bf16.vlgmr.msrb.gmra.mxu3 %v269_v62 }
 0x375   :  { %v279_v6 = vpop.f32.mrf.mxu3 }
 0x376   :  { %v284_v9 = vsub.f32 %v279_v6, %v104_v7 }
 0x378   :  { %v286_v12 = vmul.f32 %v284_v9, %v284_v9 }
 0x37d   :  { %v281_v10 = vpop.f32.mrf.mxu3 }
 0x37e   :  { %v285_v11 = vsub.f32 %v281_v10, %v105_v8 }
 0x380   :  { %v287_v13 = vmul.f32 %v285_v11, %v285_v11 }
 0x382   :  { %v288_v14 = vpack.c.bf16 %v287_v13, %v286_v12 }
 0x384   :  { %472 = vmatmul.msk.bf16.vlgmr.msrb.gmra.mxu0 %vm112_vm1, %v288_v14 }
 0x401   :  { %v304_v20 = vpop.f32.mrf.mxu0 }
 0x402   :  { %v319_v21 = vadd.f32 %v318_v19, %v304_v20 }
 0x404   :  { %v323_v25 = vadd.f32 %v566_v17, %v319_v21 }
 0x406   :  { %v325_v29 = vmax.f32 %v323_v25, 0.0 }
 0x409   :  { %v306_v24 = vpop.f32.mrf.mxu0 }
 0x40a   :  { %v321_v26 = vadd.f32 %v320_v22, %v306_v24 }
 0x40c   :  { %v324_v28 = vadd.f32 %v566_v17, %v321_v26  ;;  %v55_v17 = vld [vmem:[%s766_s1 + $0xd8] sm:$0xff] }
 0x40d   :  { %v62_v38 = vpack.c.bf16 %v55_v17, %v54_v36 }
 0x40e   :  { %v326_v30 = vmax.f32 %v324_v28, 0.0 }
 0x40f   :  { %357 = vmatpush.bf16.msra.mxu0 %v62_v38 }
 0x410   :  { %v327_v32 = vpack.c.bf16 %v326_v30, %v325_v29 }
 0x412   :  { %474 = vmatmul.msk.bf16.vlgmr.msrb.gmra.mxu2 %vm138_vm2, %v327_v32 }
 0x413   :  { %358 = vmatpush.bf16.msra.mxu0 %v61_v41 }
 0x417   :  { %359 = vmatpush.bf16.msra.mxu0 %v60_v44 }
 0x495   :  { %v340_v48 = vpop.f32.mrf.mxu2 }
 0x496   :  { %v341_v49 = vadd.f32 %v598_v37, %v340_v48 }
 0x498   :  { %v345_v52 = vmax.f32 %v341_v49, 0.0 }
 0x49d   :  { %v342_v50 = vpop.f32.mrf.mxu2 }
 0x49e   :  { %v343_v51 = vadd.f32 %v598_v37, %v342_v50 }
 0x4a0   :  { %v346_v53 = vmax.f32 %v343_v51, 0.0 }
 0x4a2   :  { %v347_v54 = vpack.c.bf16 %v346_v53, %v345_v52 }
 0x4a4   :  { %475 = vmatmul.msk.bf16.vlgmr.msra.gmra.mxu0 %vm163_vm3, %v347_v54 }
 0x521   :  { %v361_v58 = vpop.f32.mrf.mxu0 }
 0x522   :  { %v362_v60 = vadd.f32 %v486_v59, %v361_v58 }
 0x524   :  { %v366_v62 = vmax.f32 %v362_v60, 0.0 }
 0x529   :  { %v363_v37 = vpop.f32.mrf.mxu0 }
 0x52a   :  { %v364_v61 = vadd.f32 %v486_v59, %v363_v37 }
 0x52c   :  { %v367_v63 = vmax.f32 %v364_v61, 0.0 }
 0x52e   :  { %v368_v0 = vpack.c.bf16 %v367_v63, %v366_v62 }
 0x530   :  { %476 = vmatmul.msk.bf16.vlgmr.msrb.gmra.mxu1 %vm138_vm2, %v368_v0 }
 0x5ad   :  { %v385_v1 = vpop.f32.mrf.mxu1 }
 0x5ae   :  { %v386_v3 = vadd.f32 %v487_v2, %v385_v1 }
 0x5b0   :  { %v390_v6 = vmax.f32 %v386_v3, 0.0 }
 0x5b5   :  { %v387_v4 = vpop.f32.mrf.mxu1 }
 0x5b6   :  { %v388_v5 = vadd.f32 %v487_v2, %v387_v4 }
 0x5b8   :  { %v391_v7 = vmax.f32 %v388_v5, 0.0 }
 0x5ba   :  { %v392_v8 = vpack.c.bf16 %v391_v7, %v390_v6 }
 0x5bc   :  { %477 = vmatmul.msk.bf16.vlgmr.msra.gmra.mxu2 %vm138_vm2, %v392_v8 }
 0x63f   :  { %v408_v9 = vpop.f32.mrf.mxu2 }
 0x640   :  { %v413_v10 = vadd.f32 %v408_v9, %v676_v27 }
 0x642   :  { %v415_v11 = vadd.f32 %v668_v23, %v413_v10 }
 0x644   :  { %v478_v12 = vmul.f32 -1.442695, %v415_v11 }
 0x646   :  { %496 = vpow2.f32 %v478_v12 }
 0x647   :  { %v410_v13 = vpop.f32.mrf.mxu2 }
 0x648   :  { %v414_v14 = vadd.f32 %v410_v13, %v680_v31 }
 0x64a   :  { %v416_v15 = vadd.f32 %v668_v23, %v414_v14 }
 0x64c   :  { %v497_v16 = vpop.eup %496  ;;  %v479_v18 = vmul.f32 -1.442695, %v416_v15 }
 0x64d   :  { %v423_v19 = vadd.f32 1.0, %v497_v16 }
 0x64e   :  { %498 = vpow2.f32 %v479_v18 }
 0x64f   :  { %500 = vrcp.f32 %v423_v19  ;;  %v436_v25 = vand.u32 2147483648, %v423_v19  ;;  %v434_v28 = vand.u32 2147483647, %v423_v19  ;;  %vm430_vm13 = vweird.f32 %v423_v19 }
 0x651   :  { %v437_v23 = vor.u32 1.1754944e-38, %v436_v25  ;;  %vm435_vm15 = vcmp.eq.f32.partialorder %v434_v28, 8.507059e+37 }
 0x654   :  { %v499_v20 = vpop.eup %498 }
 0x655   :  { %v501_v21 = vpop.eup %500  ;;  %v424_v22 = vadd.f32 1.0, %v499_v20 }
 0x656   :  { %v426_v24 = vmul.f32 %v501_v21, %v423_v19  ;;  %vm431_vm12 = vweird.f32 %v501_v21 }
 0x657   :  { %502 = vrcp.f32 %v424_v22  ;;  %vm432_vm14 = vmor %vm430_vm13, %vm431_vm12  ;;  %v451_v35 = vand.u32 2147483648, %v424_v22  ;;  %v449_v17 = vand.u32 2147483647, %v424_v22  ;;  %vm445_vm1 = vweird.f32 %v424_v22 }
 0x658   :  { %v427_v27 = vsub.f32 1.0, %v426_v24 }
 0x659   :  { %v452_v39 = vor.u32 1.1754944e-38, %v451_v35  ;;  %vm450_vm3 = vcmp.eq.f32.partialorder %v449_v17, 8.507059e+37 }
 0x65a   :  { %v428_v26 = vmul.f32 %v501_v21, %v427_v27 }
 0x65c   :  { %v429_v29 = vadd.f32 %v501_v21, %v428_v26 }
 0x65d   :  { %v503_v31 = vpop.eup %502 }
 0x65e   :  { %v433_v30 = vsel %vm432_vm14, %v501_v21, %v429_v29  ;;  %v441_v32 = vmul.f32 %v503_v31, %v424_v22  ;;  %vm446_vm0 = vweird.f32 %v503_v31 }
 0x65f   :  { %v438_v33 = vsel %vm435_vm15, %v437_v23, %v433_v30  ;;  %vm447_vm2 = vmor %vm445_vm1, %vm446_vm0 }
 0x660   :  { %455 = vst [vmem:[%s769_s3] sm:$0xff] %v438_v33  ;;  %v442_v34 = vsub.f32 1.0, %v441_v32 }
 0x662   :  { %v443_v36 = vmul.f32 %v503_v31, %v442_v34 }
 0x664   :  { %v444_v38 = vadd.f32 %v503_v31, %v443_v36 }
 0x666   :  { %v448_v40 = vsel %vm447_vm2, %v503_v31, %v444_v38 }
 0x667   :  { %v453_v41 = vsel %vm450_vm3, %v452_v39, %v448_v40 }
 0x668   :  { %456 = vst [vmem:[%s769_s3 + $0x8] sm:$0xff] %v453_v41 }

</bundles_post_ra>
